<compile_context>
chip_gen: v7x
topology: tpu7x:2x2x1
jax: 0.10.0
libtpu: 0.0.40
codegen_flags: <defaults>
</compile_context>

<pallas_src>
import jax
import jax.numpy as jnp
from jax.experimental import pallas as pl
from jax.experimental.pallas import tpu as pltpu

FILTER_SIZES = (2, 4, 6, 8)
NEG_SLOPE = 0.2          # LeakyReLU(0.2)
NUM_CLASSES = 3          # 2 + 1
FC_HIDDEN = 64
HPAD = 128               # fc1 output lanes (64 -> 128, lane-dense)
OPAD = 128               # logits lanes (3 -> 128, lane-dense store)
MASK_NEG = -1e30


def _round_up(a, m):
    return ((a + m - 1) // m) * m


def _leaky_relu(x):
    return jnp.where(x > 0, x, NEG_SLOPE * x)


# ---------------------------------------------------------------------------
# Pallas kernel: fused conv matmul + masked running max-pool + padded MLP head
# ---------------------------------------------------------------------------
def discriminator_kernel(win_ref, wc_ref, bias_ref, mask_ref,
                         fc1w_ref, fc2w_ref, out_ref, max_sc):
    t = pl.program_id(1)
    tb, tt, kw = win_ref.shape                   # [tb, tt, 8E] bf16 window slab

    @pl.when(t == 0)
    def _():                                     # init running max per batch tile
        max_sc[...] = jnp.full(max_sc.shape, MASK_NEG, dtype=max_sc.dtype)

    # All four convolutions for this window tile as a single MXU matmul.
    acc = jnp.dot(win_ref[...].reshape(tb * tt, kw), wc_ref[...],
                  preferred_element_type=jnp.float32)          # [tb*tt, npad] f32
    acted = _leaky_relu(acc.reshape(tb, tt, -1) + bias_ref[0:1, :])
    acted = acted + mask_ref[...]                # invalid windows -> -1e30 (additive)
    max_sc[...] = jnp.maximum(max_sc[...], jnp.max(acted, axis=1))

    @pl.when(t == pl.num_programs(1) - 1)
    def _():
        # MLP head (dropout is identity at inference); 128-wide padded operands,
        # lane-dense unmasked final store.
        feature = max_sc[...]                                   # [tb, npad]
        h = jnp.dot(feature.astype(jnp.bfloat16), fc1w_ref[...],
                    preferred_element_type=jnp.float32) + bias_ref[1:2, :HPAD]
        h = _leaky_relu(h)
        logits = jnp.dot(h.astype(jnp.bfloat16), fc2w_ref[...],
                         preferred_element_type=jnp.float32) + bias_ref[2:3, :OPAD]
        out_ref[...] = logits.astype(out_ref.dtype)


# ---------------------------------------------------------------------------
# Tile selection (batch tile tb, window tile tt)
# ---------------------------------------------------------------------------
def _choose_tiles(B, T_all, E, npad):
    # Per (batch, window) row held in VMEM per grid step: bf16 window slab
    # (double-buffered by the pipeline) + f32 matmul/activation temporaries.
    row_bytes = 8 * E * 2 * 2 + npad * 4 * 3
    budget = 8 << 20                    # conservative; fits v7x's 64 MiB VMEM easily

    # Batch tile: keep >= 2 'parallel' grid steps when B allows an 8-aligned
    # split (v7x has 2 TensorCores); otherwise tb == B is always (8,128)-legal.
    tb = B // 2 if (B % 16 == 0) else B

    # Window tile: start at T_all (a multiple of 16, so bf16 sublane tiles stay
    # aligned through the in-kernel [tb,tt,8E]->[tb*tt,8E] reshape) and halve
    # while over budget, keeping the MXU M dimension (tb*tt) at >= ~256 rows.
    tt = T_all
    while tt % 32 == 0 and tb * tt * row_bytes > budget and tb * (tt // 2) >= 256:
        tt //= 2
    return tb, tt


# ---------------------------------------------------------------------------
# Wrapper
# ---------------------------------------------------------------------------
def discriminator_forward(x, kp):
    B, L, E = x.shape
    assert L >= max(FILTER_SIZES), "sequence too short for the largest filter"
    T_all, L_ext, npad = kp['T_all'], kp['L_ext'], kp['npad']
    fmax = FILTER_SIZES[-1]

    # im2col in the wrapper (XLA pad/slice, done in HBM): lane-dense bf16 slab
    # windows[b, t, i*E + e] = x[b, t + i, e], last dim 8*E is a 128-multiple.
    x_ext = jnp.pad(x, ((0, 0), (0, L_ext - L), (0, 0)))
    windows = jnp.concatenate([x_ext[:, i:i + T_all, :] for i in range(fmax)],
                              axis=-1).astype(jnp.bfloat16)      # [B, T_all, 8E]

    tb, tt = _choose_tiles(B, T_all, E, npad)
    grid = (B // tb, T_all // tt)

    def invariant(shape):
        return pl.BlockSpec(shape, lambda i, t: (0,) * len(shape))

    out = pl.pallas_call(
        discriminator_kernel,
        out_shape=jax.ShapeDtypeStruct((B, OPAD), jnp.float32),
        grid_spec=pltpu.PrefetchScalarGridSpec(
            num_scalar_prefetch=0,
            grid=grid,
            in_specs=[
                pl.BlockSpec((tb, tt, fmax * E), lambda i, t: (i, t, 0)),
                invariant(kp['conv_w'].shape),       # [8E, npad] bf16
                invariant(kp['bias'].shape),         # [3, npad] f32 (packed biases)
                pl.BlockSpec((tt, npad), lambda i, t: (t, 0)),   # pool mask tile
                invariant(kp['fc1_w'].shape),        # [npad, 128] bf16
                invariant(kp['fc2_w'].shape),        # [128, 128] bf16
            ],
            out_specs=pl.BlockSpec((tb, OPAD), lambda i, t: (i, 0)),
            scratch_shapes=[pltpu.VMEM((tb, npad), jnp.float32)],   # running max
        ),
        compiler_params=pltpu.CompilerParams(
            dimension_semantics=("parallel", "arbitrary"),
            vmem_limit_bytes=32 * 1024 * 1024),
    )(windows, kp['conv_w'], kp['bias'], kp['pool_mask'],
      kp['fc1_w'], kp['fc2_w'])

    return out[:, :NUM_CLASSES]


# ---------------------------------------------------------------------------
# Parameter preprocessing (one-time, hoisted out of the per-call path)
# ---------------------------------------------------------------------------
def l2normalize(v, eps=1e-12):
    return v / (jnp.linalg.norm(v) + eps)


def spectral_normalize(w, u):
    """One power iteration, as in SpectralNorm._update_u_v (v is overwritten
    immediately in the PyTorch code, so only u matters)."""
    h = w.shape[0]
    w_mat = w.reshape(h, -1)
    v = l2normalize(w_mat.T @ u)
    u = l2normalize(w_mat @ v)
    sigma = u @ (w_mat @ v)
    return w / sigma


def prepare_kernel_params(params, seq_len):
    """Pack spectral-normalized params into MXU-friendly, lane-padded layouts."""
    L = seq_len
    fmax = FILTER_SIZES[-1]
    n = params[f'conv{FILTER_SIZES[0]}_b'].shape[0]
    E = params[f'conv{FILTER_SIZES[0]}_w'].shape[2]
    feat = len(FILTER_SIZES) * n

    npad = _round_up(max(feat, 128), 128)             # pooled-feature lanes
    # shared window count: multiple of 16 keeps bf16 sublane tiles aligned
    T_all = _round_up(L - min(FILTER_SIZES) + 1, 16)
    L_ext = T_all + fmax - 1                          # padded sequence length

    wc = jnp.zeros((fmax * E, npad), jnp.float32)
    bias = jnp.zeros((3, npad), jnp.float32)          # row0 conv, row1 fc1, row2 fc2
    valid = jnp.full((1, npad), T_all, jnp.int32)     # pad lanes stay "valid" (=0)
    for g, f in enumerate(FILTER_SIZES):
        w = params[f'conv{f}_w']                      # [n, f, E] (spectral-normed)
        wmat = jnp.transpose(w, (1, 2, 0)).reshape(f * E, n)
        wc = wc.at[:f * E, g * n:(g + 1) * n].set(wmat)
        bias = bias.at[0, g * n:(g + 1) * n].set(params[f'conv{f}_b'])
        valid = valid.at[0, g * n:(g + 1) * n].set(L - f + 1)
    pool_mask = jnp.where(jnp.arange(T_all)[:, None] < valid,
                          0.0, MASK_NEG).astype(jnp.float32)      # [T_all, npad]

    bias = bias.at[1, :FC_HIDDEN].set(params['fc1_b'])
    bias = bias.at[2, :NUM_CLASSES].set(params['fc2_b'])

    fc1w = jnp.zeros((npad, HPAD), jnp.float32).at[:feat, :FC_HIDDEN].set(params['fc1_w'].T)
    fc2w = jnp.zeros((HPAD, OPAD), jnp.float32).at[:FC_HIDDEN, :NUM_CLASSES].set(params['fc2_w'].T)

    return {
        'conv_w': wc.astype(jnp.bfloat16),   # bf16 MXU operands
        'bias': bias,                        # f32 packed biases
        'pool_mask': pool_mask,              # f32 additive -inf-style mask
        'fc1_w': fc1w.astype(jnp.bfloat16),
        'fc2_w': fc2w.astype(jnp.bfloat16),
        'T_all': T_all,
        'L_ext': L_ext,
        'npad': npad,
    }


def init_params(key, emb_size, num_filters):
    """Deterministic init + spectral norm, stored in PyTorch-style layouts."""
    feature_size = len(FILTER_SIZES) * num_filters
    keys = jax.random.split(key, 3 * len(FILTER_SIZES) + 6)
    ki = 0
    params = {}
    for f in FILTER_SIZES:
        w = 0.1 * jax.random.normal(keys[ki], (num_filters, 1, f, emb_size),
                                    jnp.float32); ki += 1
        u = l2normalize(jax.random.normal(keys[ki], (num_filters,),
                                          jnp.float32)); ki += 1
        w_sn = spectral_normalize(w, u)
        params[f'conv{f}_w'] = w_sn[:, 0]                        # [n, f, E]
        params[f'conv{f}_b'] = 0.01 * jax.random.normal(
            keys[ki], (num_filters,), jnp.float32); ki += 1

    w1 = 0.1 * jax.random.normal(keys[ki], (FC_HIDDEN, feature_size), jnp.float32); ki += 1
    u1 = l2normalize(jax.random.normal(keys[ki], (FC_HIDDEN,), jnp.float32)); ki += 1
    params['fc1_w'] = spectral_normalize(w1, u1)                 # [64, feat]
    params['fc1_b'] = 0.01 * jax.random.normal(keys[ki], (FC_HIDDEN,), jnp.float32); ki += 1

    w2 = 0.1 * jax.random.normal(keys[ki], (NUM_CLASSES, FC_HIDDEN), jnp.float32); ki += 1
    u2 = l2normalize(jax.random.normal(keys[ki], (NUM_CLASSES,), jnp.float32)); ki += 1
    params['fc2_w'] = spectral_normalize(w2, u2)                 # [3, 64]
    params['fc2_b'] = 0.01 * jax.random.normal(keys[ki], (NUM_CLASSES,), jnp.float32); ki += 1
    return params


# ---------------------------------------------------------------------------
# Pure-JAX reference (same math, same bf16-operand matmul precision)
# ---------------------------------------------------------------------------
def reference_forward(x, params):
    B, L, E = x.shape
    pools = []
    for f in FILTER_SIZES:
        w = params[f'conv{f}_w']                                  # [n, f, E]
        n = w.shape[0]
        T = L - f + 1
        wmat = jnp.transpose(w, (1, 2, 0)).reshape(f * E, n).astype(jnp.bfloat16)
        windows = jnp.concatenate([x[:, i:i + T, :] for i in range(f)], axis=-1)
        acc = jnp.einsum('btc,cn->btn', windows.astype(jnp.bfloat16), wmat,
                         preferred_element_type=jnp.float32) + params[f'conv{f}_b']
        acted = jnp.where(acc > 0, acc, NEG_SLOPE * acc)
        pools.append(jnp.max(acted, axis=1))
    feature = jnp.concatenate(pools, axis=1)                      # [B, 4n]
    h = jnp.dot(feature.astype(jnp.bfloat16),
                params['fc1_w'].T.astype(jnp.bfloat16),
                preferred_element_type=jnp.float32) + params['fc1_b']
    h = jnp.where(h > 0, h, NEG_SLOPE * h)
    return jnp.dot(h.astype(jnp.bfloat16),
                   params['fc2_w'].T.astype(jnp.bfloat16),
                   preferred_element_type=jnp.float32) + params['fc2_b']


if __name__ == "__main__":
    key = jax.random.PRNGKey(0)
    k_x, k_p = jax.random.split(key)

    # config: num_filters=16, embedding_size=32; batch=2, seq_len=16
    B, L, E, NF = 2, 16, 32, 16
    x = jax.random.normal(k_x, (B, L, E), jnp.float32)
    params = init_params(k_p, E, NF)
    kparams = prepare_kernel_params(params, L)   # one-time packing (hoisted)

    logits = discriminator_forward(x, kparams)
    logits = jax.block_until_ready(logits)

    ref = reference_forward(x, params)
    assert logits.shape == (B, NUM_CLASSES), logits.shape
    assert jnp.allclose(logits, ref, atol=2e-2, rtol=2e-2), (logits, ref)
    print("KERNEL_OK")
</pallas_src>

<mosaic_0001>
module attributes {stable_mosaic.version = 11 : i64} {
  func.func @discriminator_kernel(%arg0: i32, %arg1: i32, %arg2: memref<2x16x256xbf16, #tpu.memory_space<vmem>>, %arg3: memref<256x128xbf16, #tpu.memory_space<vmem>>, %arg4: memref<3x128xf32, #tpu.memory_space<vmem>>, %arg5: memref<16x128xf32, #tpu.memory_space<vmem>>, %arg6: memref<128x128xbf16, #tpu.memory_space<vmem>>, %arg7: memref<128x128xbf16, #tpu.memory_space<vmem>>, %arg8: memref<2x128xf32, #tpu.memory_space<vmem>>, %arg9: memref<2x128xf32, #tpu.memory_space<vmem>>) attributes {dimension_semantics = [#tpu.dimension_semantics<parallel>, #tpu.dimension_semantics<arbitrary>], iteration_bounds = array<i64: 1, 1>, scalar_prefetch = 0 : i64, scratch_operands = 1 : i64, tpu.core_type = #tpu.core_type<tc>, window_params = [{transform_indices = @transform_0, window_bounds = array<i64: 2, 16, 256>}, {pipeline_mode = #tpu.pipeline_mode<synchronous>, transform_indices = @transform_1, window_bounds = array<i64: 256, 128>}, {pipeline_mode = #tpu.pipeline_mode<synchronous>, transform_indices = @transform_2, window_bounds = array<i64: 3, 128>}, {transform_indices = @transform_3, window_bounds = array<i64: 16, 128>}, {pipeline_mode = #tpu.pipeline_mode<synchronous>, transform_indices = @transform_4, window_bounds = array<i64: 128, 128>}, {pipeline_mode = #tpu.pipeline_mode<synchronous>, transform_indices = @transform_5, window_bounds = array<i64: 128, 128>}, {transform_indices = @transform_6, window_bounds = array<i64: 2, 128>}]} {
    %c0_i32 = arith.constant 0 : i32
    %0 = arith.cmpi eq, %arg1, %c0_i32 : i32
    %1 = arith.extui %0 : i1 to i32
    %c0_i32_0 = arith.constant 0 : i32
    %2 = arith.cmpi ne, %1, %c0_i32_0 : i32
    scf.if %2 {
      %cst_18 = arith.constant -1.000000e+30 : f32
      %28 = vector.broadcast %cst_18 : f32 to vector<2x128xf32>
      %c0_19 = arith.constant 0 : index
      %c0_20 = arith.constant 0 : index
      %29 = vector.load %arg9[%c0_19, %c0_20] : memref<2x128xf32, #tpu.memory_space<vmem>>, vector<2x128xf32>
      tpu.vector_store %arg9[%c0_19, %c0_20], %28 {strides = array<i32>} : memref<2x128xf32, #tpu.memory_space<vmem>>, vector<2x128xf32>,
    } else {
    }
    %c0 = arith.constant 0 : index
    %c0_1 = arith.constant 0 : index
    %c0_2 = arith.constant 0 : index
    %3 = vector.load %arg2[%c0, %c0_1, %c0_2] : memref<2x16x256xbf16, #tpu.memory_space<vmem>>, vector<2x16x256xbf16>
    %4 = vector.shape_cast %3 : vector<2x16x256xbf16> to vector<32x256xbf16>
    %c0_3 = arith.constant 0 : index
    %c0_4 = arith.constant 0 : index
    %5 = vector.load %arg3[%c0_3, %c0_4] : memref<256x128xbf16, #tpu.memory_space<vmem>>, vector<256x128xbf16>
    %cst = arith.constant dense<0.000000e+00> : vector<32x128xf32>
    %6 = tpu.matmul %4, %5, %cst {dimension_numbers = #tpu.dot_dimension_numbers<[1], [0], [0], [1], [0, 0, 1, 1], [], []>} : vector<32x256xbf16>, vector<256x128xbf16>, vector<32x128xf32> -> vector<32x128xf32>
    %7 = vector.shape_cast %6 : vector<32x128xf32> to vector<2x16x128xf32>
    %c0_5 = arith.constant 0 : index
    %c0_6 = arith.constant 0 : index
    %8 = vector.load %arg4[%c0_5, %c0_6] : memref<3x128xf32, #tpu.memory_space<vmem>>, vector<1x128xf32>
    %9 = vector.shape_cast %8 : vector<1x128xf32> to vector<1x1x128xf32>
    %10 = vector.broadcast %9 : vector<1x1x128xf32> to vector<2x16x128xf32>
    %11 = arith.addf %7, %10 : vector<2x16x128xf32>
    %cst_7 = arith.constant 0.000000e+00 : f32
    %12 = vector.broadcast %cst_7 : f32 to vector<2x16x128xf32>
    %13 = arith.cmpf ogt, %11, %12 : vector<2x16x128xf32>
    %cst_8 = arith.constant 2.000000e-01 : f32
    %14 = vector.broadcast %cst_8 : f32 to vector<2x16x128xf32>
    %15 = arith.mulf %14, %11 : vector<2x16x128xf32>
    %16 = arith.select %13, %11, %15 : vector<2x16x128xi1>, vector<2x16x128xf32>
    %c0_9 = arith.constant 0 : index
    %c0_10 = arith.constant 0 : index
    %17 = vector.load %arg5[%c0_9, %c0_10] : memref<16x128xf32, #tpu.memory_space<vmem>>, vector<16x128xf32>
    %18 = vector.shape_cast %17 : vector<16x128xf32> to vector<1x16x128xf32>
    %19 = vector.broadcast %18 : vector<1x16x128xf32> to vector<2x16x128xf32>
    %20 = arith.addf %16, %19 : vector<2x16x128xf32>
    %c0_11 = arith.constant 0 : index
    %c0_12 = arith.constant 0 : index
    %21 = vector.load %arg9[%c0_11, %c0_12] : memref<2x128xf32, #tpu.memory_space<vmem>>, vector<2x128xf32>
    %cst_13 = arith.constant dense<0xFF800000> : vector<2x128xf32>
    %22 = vector.multi_reduction <maximumf>, %20, %cst_13 [1] : vector<2x16x128xf32> to vector<2x128xf32>
    %23 = arith.maximumf %21, %22 : vector<2x128xf32>
    %c0_14 = arith.constant 0 : index
    %c0_15 = arith.constant 0 : index
    %24 = vector.load %arg9[%c0_14, %c0_15] : memref<2x128xf32, #tpu.memory_space<vmem>>, vector<2x128xf32>
    tpu.vector_store %arg9[%c0_14, %c0_15], %23 {strides = array<i32>} : memref<2x128xf32, #tpu.memory_space<vmem>>, vector<2x128xf32>,
    %c0_i32_16 = arith.constant 0 : i32
    %25 = arith.cmpi eq, %arg1, %c0_i32_16 : i32
    %26 = arith.extui %25 : i1 to i32
    %c0_i32_17 = arith.constant 0 : i32
    %27 = arith.cmpi ne, %26, %c0_i32_17 : i32
    scf.if %27 {
      %c0_18 = arith.constant 0 : index
      %c0_19 = arith.constant 0 : index
      %28 = vector.load %arg9[%c0_18, %c0_19] : memref<2x128xf32, #tpu.memory_space<vmem>>, vector<2x128xf32>
      %29 = arith.truncf %28 : vector<2x128xf32> to vector<2x128xbf16>
      %c0_20 = arith.constant 0 : index
      %c0_21 = arith.constant 0 : index
      %30 = vector.load %arg6[%c0_20, %c0_21] : memref<128x128xbf16, #tpu.memory_space<vmem>>, vector<128x128xbf16>
      %cst_22 = arith.constant dense<0.000000e+00> : vector<2x128xf32>
      %31 = tpu.matmul %29, %30, %cst_22 {dimension_numbers = #tpu.dot_dimension_numbers<[1], [0], [0], [1], [0, 0, 1, 1], [], []>} : vector<2x128xbf16>, vector<128x128xbf16>, vector<2x128xf32> -> vector<2x128xf32>
      %c1 = arith.constant 1 : index
      %c0_23 = arith.constant 0 : index
      %32 = vector.load %arg4[%c1, %c0_23] : memref<3x128xf32, #tpu.memory_space<vmem>>, vector<1x128xf32>
      %33 = vector.broadcast %32 : vector<1x128xf32> to vector<2x128xf32>
      %34 = arith.addf %31, %33 : vector<2x128xf32>
      %cst_24 = arith.constant 0.000000e+00 : f32
      %35 = vector.broadcast %cst_24 : f32 to vector<2x128xf32>
      %36 = arith.cmpf ogt, %34, %35 : vector<2x128xf32>
      %cst_25 = arith.constant 2.000000e-01 : f32
      %37 = vector.broadcast %cst_25 : f32 to vector<2x128xf32>
      %38 = arith.mulf %37, %34 : vector<2x128xf32>
      %39 = arith.select %36, %34, %38 : vector<2x128xi1>, vector<2x128xf32>
      %40 = arith.truncf %39 : vector<2x128xf32> to vector<2x128xbf16>
      %c0_26 = arith.constant 0 : index
      %c0_27 = arith.constant 0 : index
      %41 = vector.load %arg7[%c0_26, %c0_27] : memref<128x128xbf16, #tpu.memory_space<vmem>>, vector<128x128xbf16>
      %cst_28 = arith.constant dense<0.000000e+00> : vector<2x128xf32>
      %42 = tpu.matmul %40, %41, %cst_28 {dimension_numbers = #tpu.dot_dimension_numbers<[1], [0], [0], [1], [0, 0, 1, 1], [], []>} : vector<2x128xbf16>, vector<128x128xbf16>, vector<2x128xf32> -> vector<2x128xf32>
      %c2 = arith.constant 2 : index
      %c0_29 = arith.constant 0 : index
      %43 = vector.load %arg4[%c2, %c0_29] : memref<3x128xf32, #tpu.memory_space<vmem>>, vector<1x128xf32>
      %44 = vector.broadcast %43 : vector<1x128xf32> to vector<2x128xf32>
      %45 = arith.addf %42, %44 : vector<2x128xf32>
      %c0_30 = arith.constant 0 : index
      %c0_31 = arith.constant 0 : index
      %46 = vector.load %arg8[%c0_30, %c0_31] : memref<2x128xf32, #tpu.memory_space<vmem>>, vector<2x128xf32>
      tpu.vector_store %arg8[%c0_30, %c0_31], %45 {strides = array<i32>} : memref<2x128xf32, #tpu.memory_space<vmem>>, vector<2x128xf32>,
    } else {
    }
    return
  }
  func.func @transform_0(%arg0: i32, %arg1: i32) -> (i32, i32, i32) {
    %c0_i32 = arith.constant 0 : i32
    %c0_i32_0 = arith.constant 0 : i32
    return %arg0, %arg1, %c0_i32 : i32, i32, i32
  }
  func.func @transform_1(%arg0: i32, %arg1: i32) -> (i32, i32) {
    %c0_i32 = arith.constant 0 : i32
    %c0_i32_0 = arith.constant 0 : i32
    %c0_i32_1 = arith.constant 0 : i32
    return %c0_i32, %c0_i32_0 : i32, i32
  }
  func.func @transform_2(%arg0: i32, %arg1: i32) -> (i32, i32) {
    %c0_i32 = arith.constant 0 : i32
    %c0_i32_0 = arith.constant 0 : i32
    %c0_i32_1 = arith.constant 0 : i32
    return %c0_i32, %c0_i32_0 : i32, i32
  }
  func.func @transform_3(%arg0: i32, %arg1: i32) -> (i32, i32) {
    %c0_i32 = arith.constant 0 : i32
    %c0_i32_0 = arith.constant 0 : i32
    return %arg1, %c0_i32 : i32, i32
  }
  func.func @transform_4(%arg0: i32, %arg1: i32) -> (i32, i32) {
    %c0_i32 = arith.constant 0 : i32
    %c0_i32_0 = arith.constant 0 : i32
    %c0_i32_1 = arith.constant 0 : i32
    return %c0_i32, %c0_i32_0 : i32, i32
  }
  func.func @transform_5(%arg0: i32, %arg1: i32) -> (i32, i32) {
    %c0_i32 = arith.constant 0 : i32
    %c0_i32_0 = arith.constant 0 : i32
    %c0_i32_1 = arith.constant 0 : i32
    return %c0_i32, %c0_i32_0 : i32, i32
  }
  func.func @transform_6(%arg0: i32, %arg1: i32) -> (i32, i32) {
    %c0_i32 = arith.constant 0 : i32
    %c0_i32_0 = arith.constant 0 : i32
    return %arg0, %c0_i32 : i32, i32
  }
}

</mosaic_0001>

<bundles_post_ra>
// kernel: tpu_custom_call.1
= control target key start
LH: loop header
LB: loop body
LE: loop exit
PB: predicated region body
PF: predicated region fallthrough
CT: control target
= control target key end

     0   :  { %11 = vsyncpa [#allocation4], 0  ;;  %s1065_s0 = inlined_call_operand.hbm [shape: bf16[2,16,256], index: 0, kind: input, shape index: {}]   ;;  %s1066_s1 = inlined_call_operand.hbm [shape: bf16[256,128], index: 1, kind: input, shape index: {}]   ;;  %s1067_s2 = inlined_call_operand.vmem [shape: f32[3,128], index: 2, kind: input, shape index: {}]   ;;  %s1068_s3 = inlined_call_operand.hbm [shape: f32[16,128], index: 3, kind: input, shape index: {}]   ;;  %s1069_s4 = inlined_call_operand.hbm [shape: bf16[128,128], index: 4, kind: input, shape index: {}]   ;;  %s1070_s5 = inlined_call_operand.hbm [shape: bf16[128,128], index: 5, kind: input, shape index: {}]   ;;  %s1071_s6 = inlined_call_operand.hbm [shape: f32[2,128], index: 6, kind: output, shape index: {}]  }
   0x1   :  { %12 = vsyncpa [#allocation7], 0 }
   0x2   :  { %13 = vsyncpa [#allocation10], 0 }
   0x3   :  { %14 = vsyncpa [#allocation5], 0  ;;  %s909_s21 = smov [#allocation6]   ;;  %s769_s25 = scalar_lea.hbm %s1066_s1, 2048 }
   0x4   :  { %s32_s22 = sshll.u32 %s909_s21, 4  ;;  %p770_p0 = scmp.ne.s32.totalorder %s1066_s1, %s769_s25  ;;  %s33_s22 = int_to_ptr.vmem [resolvable:$true] %s32_s22 }
   0x5   :  { %p773_p1 = scmp.lt.u32.totalorder %s769_s25, %s1066_s1 }
   0x7   :  { %p775_p2 = pnand %p773_p1, %p770_p0 }
   0x9   :  { %778 = shalt.err (!%p775_p2)
}
   0xa   :  { %s779_s30 = scalar_lea.vmem %s33_s22, 2048  ;;  %p784_p4 = scmp.lt.s32.totalorder %s33_s22, %s33_s22 }
   0xb   :  { %p780_p3 = scmp.ne.s32.totalorder %s33_s22, %s779_s30  ;;  %p785_p5 = scmp.lt.s32.totalorder %s779_s30, %s779_s30 }
   0xd   :  { %p786_p6 = por %p785_p5, %p784_p4 }
   0xf   :  { %p787_p7 = pnand %p786_p6, %p780_p3 }
  0x11   :  { %790 = shalt.err (!%p787_p7)
}
  0x12   :  { %s910_s7 = smov 64   ;;  %s911_s8 = smov 4  }
  0x13   :  { %38 = dma.hbm_to_vmem [thread:$0]  %s1066_s1, 2048, %s33_s22, [#allocation7], %s910_s7, %s910_s7, %s911_s8  }
  0x14   :  { %s912_s11 = smov [#allocation9]   ;;  %s913_s13 = smov [#allocation3]  }
  0x15   :  { %s58_s12 = sshll.u32 %s912_s11, 4  ;;  %s20_s14 = sshll.u32 %s913_s13, 4  ;;  %s59_s12 = int_to_ptr.vmem [resolvable:$true] %s58_s12  ;;  %s21_s14 = int_to_ptr.vmem [resolvable:$true] %s20_s14 }
  0x16   :  { %s791_s17 = scalar_lea.hbm %s1069_s4, 1024 }
  0x17   :  { %p792_p8 = scmp.ne.s32.totalorder %s1069_s4, %s791_s17  ;;  %p795_p9 = scmp.lt.u32.totalorder %s791_s17, %s1069_s4 }
  0x19   :  { %p797_p10 = pnand %p795_p9, %p792_p8 }
  0x1b   :  { %800 = shalt.err (!%p797_p10)
}
  0x1c   :  { %s801_s1 = scalar_lea.vmem %s59_s12, 1024  ;;  %p806_p12 = scmp.lt.s32.totalorder %s59_s12, %s59_s12 }
  0x1d   :  { %p802_p11 = scmp.ne.s32.totalorder %s59_s12, %s801_s1  ;;  %p807_p13 = scmp.lt.s32.totalorder %s801_s1, %s801_s1 }
  0x1f   :  { %p808_p0 = por %p807_p13, %p806_p12 }
  0x21   :  { %p809_p1 = pnand %p808_p0, %p802_p11 }
  0x23   :  { %812 = shalt.err (!%p809_p1)
}
  0x24   :  { %64 = dma.hbm_to_vmem [thread:$0]  %s1069_s4, 1024, %s59_s12, [#allocation10], %s910_s7, %s910_s7, %s911_s8  }
  0x25   :  { %s813_s26 = scalar_lea.hbm %s1065_s0, 512 }
  0x26   :  { %p814_p2 = scmp.ne.s32.totalorder %s1065_s0, %s813_s26  ;;  %p817_p3 = scmp.lt.u32.totalorder %s813_s26, %s1065_s0 }
  0x28   :  { %p819_p4 = pnand %p817_p3, %p814_p2 }
  0x2a   :  { %822 = shalt.err (!%p819_p4)
}
  0x2b   :  { %s823_s9 = scalar_lea.vmem %s21_s14, 512  ;;  %p828_p6 = scmp.lt.s32.totalorder %s21_s14, %s21_s14 }
  0x2c   :  { %p824_p5 = scmp.ne.s32.totalorder %s21_s14, %s823_s9  ;;  %p829_p7 = scmp.lt.s32.totalorder %s823_s9, %s823_s9 }
  0x2e   :  { %p830_p8 = por %p829_p7, %p828_p6 }
  0x30   :  { %p831_p9 = pnand %p830_p8, %p824_p5 }
  0x32   :  { %834 = shalt.err (!%p831_p9)
}
  0x33   :  { %s914_s4 = smov 128   ;;  %s915_s10 = smov 8  }
  0x34   :  { %26 = dma.hbm_to_vmem [thread:$0]  %s1065_s0, 512, %s21_s14, [#allocation4], %s914_s4, %s914_s4, %s915_s10  }
  0x35   :  { %s916_s13 = smov [#allocation8]   ;;  %s917_s16 = smov [#allocation11]  }
  0x36   :  { %s46_s15 = sshll.u32 %s916_s13, 4  ;;  %s70_s17 = sshll.u32 %s917_s16, 4  ;;  %s47_s15 = int_to_ptr.vmem [resolvable:$true] %s46_s15  ;;  %s71_s17 = int_to_ptr.vmem [resolvable:$true] %s70_s17 }
  0x37   :  { %s835_s20 = scalar_lea.hbm %s1068_s3, 256 }
  0x38   :  { %p836_p10 = scmp.ne.s32.totalorder %s1068_s3, %s835_s20  ;;  %p839_p11 = scmp.lt.u32.totalorder %s835_s20, %s1068_s3 }
  0x3a   :  { %p841_p12 = pnand %p839_p11, %p836_p10 }
  0x3c   :  { %844 = shalt.err (!%p841_p12)
}
  0x3d   :  { %s845_s0 = scalar_lea.vmem %s47_s15, 256  ;;  %p850_p0 = scmp.lt.s32.totalorder %s47_s15, %s47_s15 }
  0x3e   :  { %p846_p13 = scmp.ne.s32.totalorder %s47_s15, %s845_s0  ;;  %p851_p1 = scmp.lt.s32.totalorder %s845_s0, %s845_s0 }
  0x40   :  { %p852_p2 = por %p851_p1, %p850_p0 }
  0x42   :  { %p853_p3 = pnand %p852_p2, %p846_p13 }
  0x44   :  { %856 = shalt.err (!%p853_p3)
}
  0x45   :  { %52 = dma.hbm_to_vmem [thread:$0]  %s1068_s3, 256, %s47_s15, [#allocation7], %s914_s4, %s914_s4, %s915_s10  }
  0x46   :  { %s857_s27 = scalar_lea.hbm %s1070_s5, 1024 }
  0x47   :  { %p858_p4 = scmp.ne.s32.totalorder %s1070_s5, %s857_s27  ;;  %p861_p5 = scmp.lt.u32.totalorder %s857_s27, %s1070_s5 }
  0x49   :  { %p863_p6 = pnand %p861_p5, %p858_p4 }
  0x4b   :  { %866 = shalt.err (!%p863_p6)
}
  0x4c   :  { %s867_s11 = scalar_lea.vmem %s71_s17, 1024  ;;  %p872_p8 = scmp.lt.s32.totalorder %s71_s17, %s71_s17 }
  0x4d   :  { %p868_p7 = scmp.ne.s32.totalorder %s71_s17, %s867_s11  ;;  %p873_p9 = scmp.lt.s32.totalorder %s867_s11, %s867_s11 }
  0x4f   :  { %p874_p10 = por %p873_p9, %p872_p8 }
  0x51   :  { %p875_p11 = pnand %p874_p10, %p868_p7 }
  0x53   :  { %878 = shalt.err (!%p875_p11)
}
  0x54   :  { %76 = dma.hbm_to_vmem [thread:$0]  %s1070_s5, 1024, %s71_s17, [#allocation10], %s910_s7, %s910_s7, %s911_s8  }
  0x55   :  { %901 = dma.done.wait [#allocation4], 512  }
  0x56   :  { %902 = vsyncadd [#allocation4], 4294966784 }
  0x57   :  { %903 = dma.done.wait [#allocation7], 2304  }
  0x58   :  { %904 = vsyncadd [#allocation7], 4294964992 }
  0x59   :  { %905 = dma.done.wait [#allocation10], 2048  }
  0x5a   :  { %906 = vsyncadd [#allocation10], 4294965248  ;;  %v731_v0 = vld [vmem:[#allocation6 + $0x40] sm:$0xff]   ;;  %v733_v2 = vld [vmem:[#allocation6 + $0x48] sm:$0xff]   ;;  %v918_v21 = vmov 0.0   ;;  %vm920_vm0 = vmmov 0  }
  0x5b   :  { %v732_v1 = vld [vmem:[#allocation6] sm:$0xff]   ;;  %632 = vmatprep.subr.bf16.mxu0 %v731_v0  ;;  %v734_v3 = vld [vmem:[#allocation6 + $0x8] sm:$0xff]   ;;  %v735_v4 = vld [vmem:[#allocation6 + $0x50] sm:$0xff]   ;;  %678 = vmatprep.subr.bf16.mxu1 %v918_v21  ;;  %v919_v24 = vmov -1e+30   ;;  %vm343_vm5 = vcmask 1041409  }
  0x5c   :  { %633 = vmatpush3.bf16.msra.mxu0 %v732_v1  ;;  %v736_v5 = vld [vmem:[#allocation6 + $0x10] sm:$0xff]   ;;  %v737_v6 = vld [vmem:[#allocation6 + $0x58] sm:$0xff]   ;;  %v739_v8 = vld [vmem:[#allocation6 + $0x60] sm:$0xff]   ;;  %97 = vst [vmem:[#allocation2] sm:$0x3] %v919_v24  ;;  %694 = vmatprep.mubr.msk.bf16.mxu1 %vm920_vm0, %v918_v21  ;;  %s921_s15 = smov [#allocation12]  }
  0x5d   :  { %634 = vmatprep.subr.bf16.mxu0 %v733_v2  ;;  %v738_v7 = vld [vmem:[#allocation6 + $0x18] sm:$0xff]   ;;  %v740_v9 = vld [vmem:[#allocation6 + $0x20] sm:$0xff]   ;;  %v741_v10 = vld [vmem:[#allocation6 + $0x68] sm:$0xff]   ;;  %s582_s16 = sshll.u32 %s921_s15, 4  ;;  %s583_s16 = int_to_ptr.vmem [resolvable:$true] %s582_s16 }
  0x5e   :  { %v749_v11 = vld [vmem:[#allocation3 + $0x4] ss:$8 sps:$4 sm:$0xff]   ;;  %v743_v13 = vld [vmem:[#allocation6 + $0x70] sm:$0xff]   ;;  %v745_v15 = vld [vmem:[#allocation6 + $0x78] sm:$0xff]   ;;  %s879_s17 = scalar_lea.vmem %s583_s16, 32  ;;  %p884_p13 = scmp.lt.s32.totalorder %s583_s16, %s583_s16 }
  0x5f   :  { %v742_v12 = vld [vmem:[#allocation6 + $0x28] sm:$0xff]   ;;  %282 = vmatprep.mubr.bf16.mxu0 %v749_v11  ;;  %v744_v14 = vld [vmem:[#allocation6 + $0x30] sm:$0xff]   ;;  %v746_v16 = vld [vmem:[#allocation6 + $0x38] sm:$0xff]   ;;  %p880_p12 = scmp.ne.s32.totalorder %s583_s16, %s879_s17  ;;  %p885_p0 = scmp.lt.s32.totalorder %s879_s17, %s879_s17 }
  0x60   :  { %635 = vmatpush3.bf16.msra.mxu0 %v734_v3  ;;  %v747_v17 = vld [vmem:[#allocation3] ss:$8 sps:$4 sm:$0xff]   ;;  %v750_v18 = vld [vmem:[#allocation3 + $0x14] ss:$8 sps:$4 sm:$0xff]   ;;  %v752_v19 = vld [vmem:[#allocation3 + $0x10] ss:$8 sps:$4 sm:$0xff]  }
  0x61   :  { %636 = vmatprep.subr.bf16.mxu0 %v735_v4  ;;  %v753_v20 = vld [vmem:[#allocation9] sm:$0xff]   ;;  %v754_v22 = vld [vmem:[#allocation9 + $0x8] sm:$0xff]   ;;  %v755_v23 = vld [vmem:[#allocation9 + $0x10] sm:$0xff]   ;;  %p886_p1 = por %p885_p0, %p884_p13 }
  0x62   :  { %679 = vmatpush3.bf16.msra.mxu1 %v753_v20  ;;  %v756_v25 = vld [vmem:[#allocation9 + $0x18] sm:$0xff]   ;;  %v757_v26 = vld [vmem:[#allocation9 + $0x20] sm:$0xff]   ;;  %v758_v27 = vld [vmem:[#allocation9 + $0x28] sm:$0xff]  }
  0x63   :  { %680 = vmatprep.subr.bf16.mxu1 %v918_v21  ;;  %v759_v28 = vld [vmem:[#allocation9 + $0x30] sm:$0xff]   ;;  %v760_v29 = vld [vmem:[#allocation9 + $0x38] sm:$0xff]   ;;  %v761_v30 = vld [vmem:[#allocation11] sm:$0xff]   ;;  %p887_p2 = pnand %p886_p1, %p880_p12 }
  0x64   :  { %637 = vmatpush3.bf16.msra.mxu0 %v736_v5  ;;  %v762_v31 = vld [vmem:[#allocation11 + $0x8] sm:$0xff]   ;;  %v763_v32 = vld [vmem:[#allocation11 + $0x10] sm:$0xff]   ;;  %v764_v33 = vld [vmem:[#allocation11 + $0x18] sm:$0xff]  }
  0x65   :  { %638 = vmatprep.subr.bf16.mxu0 %v737_v6  ;;  %v765_v34 = vld [vmem:[#allocation11 + $0x20] sm:$0xff]   ;;  %v766_v35 = vld [vmem:[#allocation11 + $0x28] sm:$0xff]   ;;  %v320_v47 = vld [vmem:[#allocation8] sm:$0xff] }
  0x66   :  { %681 = vmatpush3.bf16.msra.mxu1 %v754_v22  ;;  %v613_v38 = vld [vmem:[%s1067_s2] ss:$0 sm:$0xff]  ;;  %v321_v49 = vld [vmem:[#allocation8 + $0x8] sm:$0xff] }
  0x67   :  { %682 = vmatprep.subr.bf16.mxu1 %v918_v21  ;;  %v768_v24 = vld [vmem:[#allocation11 + $0x38] sm:$0xff]  }
  0x68   :  { %639 = vmatpush3.bf16.msra.mxu0 %v738_v7 }
  0x69   :  { %640 = vmatprep.subr.bf16.mxu0 %v739_v8 }
  0x6a   :  { %683 = vmatpush3.bf16.msra.mxu1 %v755_v23  ;;  %v767_v23 = vld [vmem:[#allocation11 + $0x30] sm:$0xff]  }
  0x6b   :  { %684 = vmatprep.subr.bf16.mxu1 %v918_v21 }
  0x6c   :  { %641 = vmatpush3.bf16.msra.mxu0 %v740_v9 }
  0x6d   :  { %642 = vmatprep.subr.bf16.mxu0 %v741_v10 }
  0x6e   :  { %685 = vmatpush3.bf16.msra.mxu1 %v756_v25  ;;  %v614_v25 = vld [vmem:[%s1067_s2 + $0x1] ss:$0 sm:$0xff] }
  0x6f   :  { %686 = vmatprep.subr.bf16.mxu1 %v918_v21 }
  0x70   :  { %643 = vmatpush3.bf16.msra.mxu0 %v742_v12 }
  0x71   :  { %644 = vmatprep.subr.bf16.mxu0 %v743_v13 }
  0x72   :  { %687 = vmatpush3.bf16.msra.mxu1 %v757_v26 }
  0x73   :  { %688 = vmatprep.subr.bf16.mxu1 %v918_v21 }
  0x74   :  { %645 = vmatpush3.bf16.msra.mxu0 %v744_v14 }
  0x75   :  { %646 = vmatprep.subr.bf16.mxu0 %v745_v15 }
  0x76   :  { %689 = vmatpush3.bf16.msra.mxu1 %v758_v27 }
  0x77   :  { %690 = vmatprep.subr.bf16.mxu1 %v918_v21 }
  0x78   :  { %647 = vmatpush3.bf16.msra.mxu0 %v746_v16  ;;  %v326_v16 = vld [vmem:[#allocation2] sm:$0x3] }
  0x79   :  { %698 = vmatprep.subr.bf16.mxu0 %v918_v21 }
  0x7a   :  { %691 = vmatpush3.bf16.msra.mxu1 %v759_v28 }
  0x7b   :  { %283 = vmatmul.mubr.bf16.vlgmr.msra.gmra.mrb[0].mxu0 %v747_v17  ;;  %692 = vmatprep.subr.bf16.mxu1 %v918_v21 }
  0x7c   :  { %290 = vmatprep.mubr.bf16.mxu0 %v750_v18  ;;  %699 = vmatpush3.bf16.msra.mxu0 %v761_v30 }
  0x7d   :  { %700 = vmatprep.subr.bf16.mxu0 %v918_v21 }
  0x7e   :  { %693 = vmatpush3.bf16.msra.mxu1 %v760_v29 }
  0x80   :  { %701 = vmatpush3.bf16.msra.mxu0 %v762_v31 }
  0x81   :  { %702 = vmatprep.subr.bf16.mxu0 %v918_v21 }
  0x83   :  { %291 = vmatmul.mubr.bf16.gmra.mrb[4].mxu0 %v752_v19 }
  0x84   :  { %714 = vmatprep.mubr.msk.bf16.mxu0 %vm920_vm0, %v918_v21  ;;  %703 = vmatpush3.bf16.msra.mxu0 %v763_v32 }
  0x85   :  { %704 = vmatprep.subr.bf16.mxu0 %v918_v21 }
  0x88   :  { %705 = vmatpush3.bf16.msra.mxu0 %v764_v33 }
  0x89   :  { %706 = vmatprep.subr.bf16.mxu0 %v918_v21 }
  0x8c   :  { %707 = vmatpush3.bf16.msra.mxu0 %v765_v34 }
  0x8d   :  { %708 = vmatprep.subr.bf16.mxu0 %v918_v21 }
  0x90   :  { %709 = vmatpush3.bf16.msra.mxu0 %v766_v35 }
  0x91   :  { %710 = vmatprep.subr.bf16.mxu0 %v918_v21 }
  0x94   :  { %711 = vmatpush3.bf16.msra.mxu0 %v767_v23 }
  0x95   :  { %712 = vmatprep.subr.bf16.mxu0 %v918_v21  ;;  %v623_v21 = vld [vmem:[%s1067_s2 + $0x2] ss:$0 sm:$0xff] }
  0x98   :  { %713 = vmatpush3.bf16.msra.mxu0 %v768_v24 }
 0x14e   :  { %v648_v36 = vpop.f32.mrb[0].mxu0 }
 0x14f   :  { %v649_v37 = vpop.f32.mrb[1].mxu0 }
 0x150   :  { %v650_v39 = vadd.f32 %v649_v37, %v648_v36  ;;  %v651_v40 = vpop.f32.mrb[2].mxu0 }
 0x151   :  { %v652_v41 = vpop.f32.mrb[3].mxu0 }
 0x152   :  { %v304_v42 = vadd.f32 %v650_v39, %v613_v38  ;;  %v653_v43 = vadd.f32 %v652_v41, %v651_v40 }
 0x154   :  { %vm308_vm1 = vcmp.gt.f32.partialorder %v304_v42, 0.0  ;;  %v312_v44 = vmul.f32 0.2, %v304_v42  ;;  %v305_v45 = vadd.f32 %v653_v43, %v613_v38 }
 0x156   :  { %v316_v46 = vsel %vm308_vm1, %v304_v42, %v312_v44  ;;  %vm309_vm2 = vcmp.gt.f32.partialorder %v305_v45, 0.0  ;;  %v313_v48 = vmul.f32 0.2, %v305_v45  ;;  %v654_v50 = vpop.f32.mrb[4].mxu0 }
 0x157   :  { %v655_v51 = vpop.f32.mrb[5].mxu0  ;;  %v322_v55 = vadd.f32 %v320_v47, %v316_v46 }
 0x158   :  { %v317_v52 = vsel %vm309_vm2, %v305_v45, %v313_v48  ;;  %v656_v53 = vadd.f32 %v655_v51, %v654_v50  ;;  %v657_v54 = vpop.f32.mrb[6].mxu0 }
 0x159   :  { %v323_v56 = vadd.f32 %v321_v49, %v317_v52  ;;  %v658_v57 = vpop.f32.mrb[7].mxu0 }
 0x15a   :  { %v306_v58 = vadd.f32 %v656_v53, %v613_v38  ;;  %v659_v59 = vadd.f32 %v658_v57, %v657_v54 }
 0x15b   :  { %v327_v60 = vmax.f32 %v322_v55, %v323_v56 }
 0x15c   :  { %vm310_vm3 = vcmp.gt.f32.partialorder %v306_v58, 0.0  ;;  %v314_v61 = vmul.f32 0.2, %v306_v58  ;;  %v307_v62 = vadd.f32 %v659_v59, %v613_v38 }
 0x15d   :  { %v328_v63 = vrot.slane %v327_v60, 4 }
 0x15e   :  { %v318_v0 = vsel %vm310_vm3, %v306_v58, %v314_v61  ;;  %vm311_vm4 = vcmp.gt.f32.partialorder %v307_v62, 0.0  ;;  %v315_v1 = vmul.f32 0.2, %v307_v62 }
 0x15f   :  { %v329_v2 = vmax.f32 %v327_v60, %v328_v63  ;;  %v324_v4 = vadd.f32 %v320_v47, %v318_v0 }
 0x160   :  { %v319_v3 = vsel %vm311_vm4, %v307_v62, %v315_v1 }
 0x161   :  { %v325_v5 = vadd.f32 %v321_v49, %v319_v3  ;;  %v330_v6 = vrot.slane %v329_v2, 2 }
 0x163   :  { %v334_v7 = vmax.f32 %v324_v4, %v325_v5  ;;  %v331_v9 = vmax.f32 %v329_v2, %v330_v6 }
 0x165   :  { %v335_v8 = vrot.slane %v334_v7, 4  ;;  %v332_v12 = vrot.slane %v331_v9, 1 }
 0x167   :  { %v336_v10 = vmax.f32 %v334_v7, %v335_v8  ;;  %v333_v15 = vmax.f32 %v331_v9, %v332_v12 }
 0x169   :  { %v337_v11 = vrot.slane %v336_v10, 2 }
 0x16b   :  { %v338_v13 = vmax.f32 %v336_v10, %v337_v11 }
 0x16d   :  { %v339_v14 = vrot.slane %v338_v13, 1 }
 0x16f   :  { %v340_v17 = vmax.f32 %v338_v13, %v339_v14 }
 0x171   :  { %v344_v18 = vsel %vm343_vm5, %v340_v17, %v333_v15 }
 0x172   :  { %v346_v19 = vmax.f32 %v326_v16, %v344_v18 }
 0x174   :  { %347 = vst [vmem:[#allocation2] sm:$0x3] %v346_v19 }
 0x17b   :  { %v351_v20 = vld [vmem:[#allocation2] sm:$0x3] }
 0x17c   :  { %v352_v22 = vpack.c.bf16 %v351_v20, %v351_v20 }
 0x17e   :  { %695 = vmatmul.mubr.bf16.vlgmr.msra.gmra.mrb[0].mxu1 %v352_v22 }
 0x251   :  { %v456_v26 = vpop.f32.mrb[0].mxu1 }
 0x252   :  { %v457_v27 = vadd.f32 %v614_v25, %v456_v26  ;;  %v696_v28 = vpop.f32.mrb[1].mxu1 }
 0x253   :  { %v459_v29 = vpop.f32.mrb[2].mxu1 }
 0x254   :  { %vm462_vm6 = vcmp.gt.f32.partialorder %v457_v27, 0.0  ;;  %v463_v30 = vmul.f32 0.2, %v457_v27  ;;  %v697_v31 = vpop.f32.mrb[3].mxu1 }
 0x256   :  { %v464_v32 = vsel %vm462_vm6, %v457_v27, %v463_v30 }
 0x257   :  { %v465_v33 = vpack.c.bf16 %v464_v32, %v464_v32 }
 0x259   :  { %715 = vmatmul.mubr.bf16.vlgmr.msra.gmra.mrb[8].mxu0 %v465_v33 }
 0x32c   :  { %v569_v34 = vpop.f32.mrb[8].mxu0 }
 0x32d   :  { %v570_v35 = vadd.f32 %v623_v21, %v569_v34  ;;  %v716_v36 = vpop.f32.mrb[9].mxu0 }
 0x32e   :  { %v572_v37 = vpop.f32.mrb[10].mxu0 }
 0x32f   :  { %575 = vst [vmem:[#allocation12] sm:$0x3] %v570_v35  ;;  %v717_v38 = vpop.f32.mrb[11].mxu0 }
 0x330   :  { %890 = shalt.err (!%p887_p2)
}
 0x331   :  { %s891_s2 = scalar_lea.hbm %s1071_s6, 32 }
 0x332   :  { %p892_p3 = scmp.ne.s32.totalorder %s1071_s6, %s891_s2  ;;  %p895_p4 = scmp.lt.u32.totalorder %s891_s2, %s1071_s6 }
 0x334   :  { %p897_p5 = pnand %p895_p4, %p892_p3 }
 0x336   :  { %900 = shalt.err (!%p897_p5)
}
 0x337   :  { %585 = dma.vmem_to_hbm [thread:$0]  %s583_s16, 32, %s1071_s6, [#allocation5]  }
 0x338   :  { %907 = dma.done.wait [#allocation5], 32  }
 0x339   :  { %908 = vsyncadd [#allocation5], 4294967264 }
 0x33a   :  { %589 = vsyncpa [#allocation4], 1 }
 0x33b   :  { %590 = vsyncpa [#allocation7], 1 }
 0x33c   :  { %591 = vsyncpa [#allocation10], 1 }
 0x33d   :  { %592 = vsyncpa [#allocation5], 1 }

</bundles_post_ra>
